<compile_context>
chip_gen: v7x
topology: tpu7x:2x2x1
jax: 0.10.0
libtpu: 0.0.40
codegen_flags: <defaults>
</compile_context>

<pallas_src>
import jax
import jax.numpy as jnp
from jax.experimental import pallas as pl
from jax.experimental.pallas import tpu as pltpu

FEATURE_DIM = 32   # feature_dim
RES = 8            # resolution (h == w); l_reg2 in_features = CH * RES * RES
CH = 3             # counting-head channels ("c" in the module)
BATCH = 2


def _counting_head_kernel(patches_ref, w1_ref, b1_ref, wr_ref, br_ref,
                          w2_ref, sel_ref, b2_ref, out_ref, act_ref):
    # patches_ref: (9F, M)   im2col'd reflect-padded input, M = B*H*W
    # w1_ref:      (F, 9F)   conv weight, taps folded into K
    # b1_ref:      (F, 1)    conv bias (per-row)
    # wr_ref:      (C, F)    l_reg weight
    # br_ref:      (C, 1)    l_reg bias (per-row)
    # w2_ref:      (C, M)    l_reg2 weight, reshaped to (C, hw) and tiled over batch
    # sel_ref:     (M, B)    block-diagonal batch selector (ones over each hw segment)
    # b2_ref:      (1,)      l_reg2 bias scalar, in SMEM
    # out_ref:     (1, B)    l_reg2 output
    # act_ref:     (C, M)    post-relu activations (lane-dense)

    # conv (im2col) + bias -> sigmoid; result stays feature-major (F, M).
    s = jax.nn.sigmoid(
        jnp.dot(w1_ref[...], patches_ref[...],
                preferred_element_type=jnp.float32) + b1_ref[...])        # (F, M)

    # l_reg + bias -> relu, still feature-major (C, M).
    y = jnp.maximum(
        jnp.dot(wr_ref[...], s, preferred_element_type=jnp.float32)
        + br_ref[...], 0.0)                                               # (C, M)

    # Lane-dense activation store (last dim = M = 128).
    act_ref[...] = y

    # l_reg2: per-batch <flattened activations, weight> + bias.
    ps = jnp.sum(y * w2_ref[...], axis=0, keepdims=True)                  # (1, M)
    out_ref[...] = (jnp.dot(ps, sel_ref[...],
                            preferred_element_type=jnp.float32)
                    + b2_ref[0])                                          # (1, B)


def counting_head_simple(x_nchw, params):
    """x_nchw: (B, F, H, W) float32 -> (out (B,), intermediate_image (B, C*H*W))."""
    B, F, H, W = x_nchw.shape
    C = CH
    hw = H * W
    M = B * hw

    # --- layout glue (wrapper, plain JAX): pad + im2col -------------------
    x_nhwc = jnp.transpose(x_nchw, (0, 2, 3, 1))                          # (B,H,W,F)
    x_pad = jnp.pad(x_nhwc, ((0, 0), (1, 1), (1, 1), (0, 0)), mode="reflect")
    taps = [x_pad[:, ky:ky + H, kx:kx + W, :]
            for ky in range(3) for kx in range(3)]
    patches = jnp.stack(taps, axis=3).reshape(M, 9 * F)                   # (M, 9F)
    patches_t = patches.T                                                 # (9F, M)

    # --- parameter re-layout (could be hoisted/cached by the caller) ------
    # conv weight (F_out, F_in, 3, 3) -> (F_out, 9*F_in) matching patch K order.
    w1_t = jnp.transpose(params["conv1_w"], (0, 2, 3, 1)).reshape(F, 9 * F)
    b1 = params["conv1_b"].reshape(F, 1)
    wr = params["l_reg_w"]                                                # (C, F)
    br = params["l_reg_b"].reshape(C, 1)
    # l_reg2 weight (1, C*hw) -> (C, hw), tiled across batch along lanes.
    w2 = jnp.tile(params["l_reg2_w"].reshape(C, hw), (1, B))              # (C, M)
    # batch selector: sel[b*hw + p, b'] = (b == b')
    sel = jnp.repeat(jnp.eye(B, dtype=jnp.float32), hw, axis=0)           # (M, B)
    b2 = params["l_reg2_b"].reshape(1)

    out, act = pl.pallas_call(
        _counting_head_kernel,
        out_shape=(
            jax.ShapeDtypeStruct((1, B), jnp.float32),    # l_reg2 output
            jax.ShapeDtypeStruct((C, M), jnp.float32),    # post-relu activations
        ),
        in_specs=[
            pl.BlockSpec(memory_space=pltpu.MemorySpace.VMEM),   # patches_t
            pl.BlockSpec(memory_space=pltpu.MemorySpace.VMEM),   # w1_t
            pl.BlockSpec(memory_space=pltpu.MemorySpace.VMEM),   # b1
            pl.BlockSpec(memory_space=pltpu.MemorySpace.VMEM),   # wr
            pl.BlockSpec(memory_space=pltpu.MemorySpace.VMEM),   # br
            pl.BlockSpec(memory_space=pltpu.MemorySpace.VMEM),   # w2
            pl.BlockSpec(memory_space=pltpu.MemorySpace.VMEM),   # sel
            pl.BlockSpec(memory_space=pltpu.MemorySpace.SMEM),   # b2 scalar
        ],
        out_specs=(
            pl.BlockSpec(memory_space=pltpu.MemorySpace.VMEM),
            pl.BlockSpec(memory_space=pltpu.MemorySpace.VMEM),
        ),
    )(patches_t, w1_t, b1, wr, br, w2, sel, b2)

    # rearrange 'b (h w) c -> b (c h w)' (layout glue) + torch .squeeze()
    intermediate_image = act.reshape(C, B, hw).transpose(1, 0, 2).reshape(B, C * hw)
    return out.reshape(B), intermediate_image


def _reference(x_nchw, params):
    """Pure-JAX reference matching the PyTorch forward (simple branch)."""
    B, F, H, W = x_nchw.shape
    C = CH
    xp = jnp.pad(x_nchw, ((0, 0), (0, 0), (1, 1), (1, 1)), mode="reflect")
    y = jax.lax.conv_general_dilated(
        xp, params["conv1_w"], window_strides=(1, 1), padding="VALID",
        dimension_numbers=("NCHW", "OIHW", "NCHW"))
    y = jax.nn.sigmoid(y + params["conv1_b"].reshape(1, F, 1, 1))
    y = jnp.transpose(y, (0, 2, 3, 1)).reshape(B, H * W, F)
    y = jnp.maximum(y @ params["l_reg_w"].T + params["l_reg_b"], 0.0)
    inter = jnp.transpose(y, (0, 2, 1)).reshape(B, C * H * W)
    out = inter @ params["l_reg2_w"].T + params["l_reg2_b"]
    return out.reshape(B), inter


if __name__ == "__main__":
    key = jax.random.PRNGKey(0)
    ks = jax.random.split(key, 7)
    B, F, H, W, C = BATCH, FEATURE_DIM, RES, RES, CH

    x = jax.random.normal(ks[0], (B, F, H, W), dtype=jnp.float32)
    params = {
        "conv1_w": 0.1 * jax.random.normal(ks[1], (F, F, 3, 3), jnp.float32),
        "conv1_b": 0.1 * jax.random.normal(ks[2], (F,), jnp.float32),
        "l_reg_w": 0.1 * jax.random.normal(ks[3], (C, F), jnp.float32),
        "l_reg_b": 0.1 * jax.random.normal(ks[4], (C,), jnp.float32),
        "l_reg2_w": 0.1 * jax.random.normal(ks[5], (1, C * H * W), jnp.float32),
        "l_reg2_b": 0.1 * jax.random.normal(ks[6], (1,), jnp.float32),
    }

    out, inter = jax.jit(counting_head_simple)(x, params)
    jax.block_until_ready((out, inter))

    ref_out, ref_inter = _reference(x, params)
    assert out.shape == (B,) and inter.shape == (B, C * H * W)
    assert jnp.allclose(out, ref_out, rtol=1e-4, atol=1e-4)
    assert jnp.allclose(inter, ref_inter, rtol=1e-4, atol=1e-4)

    print("KERNEL_OK")
</pallas_src>

<mosaic_0001>
module attributes {stable_mosaic.version = 11 : i64} {
  func.func @_counting_head_kernel(%arg0: memref<288x128xf32, #tpu.memory_space<vmem>>, %arg1: memref<32x288xf32, #tpu.memory_space<vmem>>, %arg2: memref<32x1xf32, #tpu.memory_space<vmem>>, %arg3: memref<3x32xf32, #tpu.memory_space<vmem>>, %arg4: memref<3x1xf32, #tpu.memory_space<vmem>>, %arg5: memref<3x128xf32, #tpu.memory_space<vmem>>, %arg6: memref<128x2xf32, #tpu.memory_space<vmem>>, %arg7: memref<1xf32, #tpu.memory_space<smem>>, %arg8: memref<1x2xf32, #tpu.memory_space<vmem>>, %arg9: memref<3x128xf32, #tpu.memory_space<vmem>>) attributes {dimension_semantics = [], scalar_prefetch = 0 : i64, scratch_operands = 0 : i64, tpu.core_type = #tpu.core_type<tc>} {
    %c0 = arith.constant 0 : index
    %c0_0 = arith.constant 0 : index
    %0 = vector.load %arg1[%c0, %c0_0] : memref<32x288xf32, #tpu.memory_space<vmem>>, vector<32x288xf32>
    %c0_1 = arith.constant 0 : index
    %c0_2 = arith.constant 0 : index
    %1 = vector.load %arg0[%c0_1, %c0_2] : memref<288x128xf32, #tpu.memory_space<vmem>>, vector<288x128xf32>
    %cst = arith.constant dense<0.000000e+00> : vector<32x128xf32>
    %2 = tpu.matmul %0, %1, %cst {dimension_numbers = #tpu.dot_dimension_numbers<[1], [0], [0], [1], [0, 0, 1, 1], [], []>} : vector<32x288xf32>, vector<288x128xf32>, vector<32x128xf32> -> vector<32x128xf32>
    %c0_3 = arith.constant 0 : index
    %c0_4 = arith.constant 0 : index
    %3 = vector.load %arg2[%c0_3, %c0_4] : memref<32x1xf32, #tpu.memory_space<vmem>>, vector<32x1xf32>
    %4 = vector.broadcast %3 : vector<32x1xf32> to vector<32x128xf32>
    %5 = arith.addf %2, %4 : vector<32x128xf32>
    %6 = arith.negf %5 : vector<32x128xf32>
    %7 = math.exp %6 : vector<32x128xf32>
    %cst_5 = arith.constant 1.000000e+00 : f32
    %8 = vector.broadcast %cst_5 : f32 to vector<32x128xf32>
    %9 = arith.addf %8, %7 : vector<32x128xf32>
    %10 = arith.divf %8, %9 : vector<32x128xf32>
    %c0_6 = arith.constant 0 : index
    %c0_7 = arith.constant 0 : index
    %11 = vector.load %arg3[%c0_6, %c0_7] : memref<3x32xf32, #tpu.memory_space<vmem>>, vector<3x32xf32>
    %cst_8 = arith.constant dense<0.000000e+00> : vector<3x128xf32>
    %12 = tpu.matmul %11, %10, %cst_8 {dimension_numbers = #tpu.dot_dimension_numbers<[1], [0], [0], [1], [0, 0, 1, 1], [], []>} : vector<3x32xf32>, vector<32x128xf32>, vector<3x128xf32> -> vector<3x128xf32>
    %c0_9 = arith.constant 0 : index
    %c0_10 = arith.constant 0 : index
    %13 = vector.load %arg4[%c0_9, %c0_10] : memref<3x1xf32, #tpu.memory_space<vmem>>, vector<3x1xf32>
    %14 = vector.broadcast %13 : vector<3x1xf32> to vector<3x128xf32>
    %15 = arith.addf %12, %14 : vector<3x128xf32>
    %cst_11 = arith.constant 0.000000e+00 : f32
    %16 = vector.broadcast %cst_11 : f32 to vector<3x128xf32>
    %17 = arith.maximumf %15, %16 : vector<3x128xf32>
    %c0_12 = arith.constant 0 : index
    %c0_13 = arith.constant 0 : index
    %18 = vector.load %arg9[%c0_12, %c0_13] : memref<3x128xf32, #tpu.memory_space<vmem>>, vector<3x128xf32>
    tpu.vector_store %arg9[%c0_12, %c0_13], %17 {strides = array<i32>} : memref<3x128xf32, #tpu.memory_space<vmem>>, vector<3x128xf32>,
    %c0_14 = arith.constant 0 : index
    %c0_15 = arith.constant 0 : index
    %19 = vector.load %arg5[%c0_14, %c0_15] : memref<3x128xf32, #tpu.memory_space<vmem>>, vector<3x128xf32>
    %20 = arith.mulf %17, %19 : vector<3x128xf32>
    %cst_16 = arith.constant dense<0.000000e+00> : vector<128xf32>
    %21 = vector.multi_reduction <add>, %20, %cst_16 [0] : vector<3x128xf32> to vector<128xf32>
    %22 = vector.shape_cast %21 : vector<128xf32> to vector<1x128xf32>
    %c0_17 = arith.constant 0 : index
    %c0_18 = arith.constant 0 : index
    %23 = vector.load %arg6[%c0_17, %c0_18] : memref<128x2xf32, #tpu.memory_space<vmem>>, vector<128x2xf32>
    %cst_19 = arith.constant dense<0.000000e+00> : vector<1x2xf32>
    %24 = tpu.matmul %22, %23, %cst_19 {dimension_numbers = #tpu.dot_dimension_numbers<[1], [0], [0], [1], [0, 0, 1, 1], [], []>} : vector<1x128xf32>, vector<128x2xf32>, vector<1x2xf32> -> vector<1x2xf32>
    %c0_20 = arith.constant 0 : index
    %25 = memref.load %arg7[%c0_20] : memref<1xf32, #tpu.memory_space<smem>>
    %26 = vector.broadcast %25 : f32 to vector<1x2xf32>
    %27 = arith.addf %24, %26 : vector<1x2xf32>
    %c0_21 = arith.constant 0 : index
    %c0_22 = arith.constant 0 : index
    %28 = vector.load %arg8[%c0_21, %c0_22] : memref<1x2xf32, #tpu.memory_space<vmem>>, vector<1x2xf32>
    tpu.vector_store %arg8[%c0_21, %c0_22], %27 {strides = array<i32>} : memref<1x2xf32, #tpu.memory_space<vmem>>, vector<1x2xf32>,
    return
  }
}

</mosaic_0001>

<bundles_post_ra>
// kernel: tile.7
= control target key start
LH: loop header
LB: loop body
LE: loop exit
PB: predicated region body
PF: predicated region fallthrough
CT: control target
= control target key end

     0   :  { %vm16_vm0 = vcmask 523264   ;;  %vm22_vm1 = vcmask 1048064   ;;  %s57_s0 = inlined_call_operand.vmem [shape: f32[3,2,64], index: 0, kind: input, shape index: {}]   ;;  %s58_s1 = inlined_call_operand.vmem [shape: f32[3,128], index: 1, kind: output, shape index: {}]  }
   0x1   :  { %v31_v0 = vld [vmem:[%s57_s0 + $0x4] sm:$0x3]  ;;  %v32_v1 = vld [vmem:[%s57_s0 + $0x2] sm:$0x3]  ;;  %v13_v2 = vld [vmem:[%s57_s0] sm:$0x3] }
   0x2   :  { %8 = vst [vmem:[#allocation1 + $0x10] sm:$0x3] %v31_v0  ;;  %12 = vst [vmem:[#allocation1 + $0x8] sm:$0x3] %v32_v1  ;;  %s34_s0 = smov 64  }
   0x3   :  { %14 = vst [vmem:[#allocation1] sm:$0x3] %v13_v2 }
   0xa   :  { %v19_v3 = vld [vmem:[#allocation1 + $0x1] ss:$8 sm:$0x7]   ;;  %v15_v4 = vld [vmem:[#allocation1] ss:$8 sm:$0x7]  }
   0xb   :  { %20 = vrot.lane.b32.xlu0 %v19_v3, %s34_s0  ;;  %17 = vst.msk [vmem:[#allocation0] sm:$0x7] %vm16_vm0, %v15_v4  }
  0x7d   :  { %v21_v5 = vpop.permute.xlu0 %20  }
  0x7e   :  { %23 = vst.msk [vmem:[#allocation0] sm:$0x7] %vm22_vm1, %v21_v5  }
  0x85   :  { %v27_v6 = vld [vmem:[#allocation0] sm:$0xf] }
  0x86   :  { %29 = vst [vmem:[%s58_s1] sm:$0xf] %v27_v6 }

// kernel: counting_head_simple.1
= control target key start
LH: loop header
LB: loop body
LE: loop exit
PB: predicated region body
PF: predicated region fallthrough
CT: control target
= control target key end

     0   :  { %v772_v7 = vmov 0   ;;  %vm105_vm0 = vcmask 261120   ;;  %s1077_s0 = inlined_call_operand.vmem [shape: f32[288,128], index: 0, kind: input, shape index: {}]   ;;  %s1078_s1 = inlined_call_operand.vmem [shape: f32[32,288], index: 1, kind: input, shape index: {}]   ;;  %s1079_s2 = inlined_call_operand.vmem [shape: f32[32,1], index: 2, kind: input, shape index: {}]   ;;  %s1080_s3 = inlined_call_operand.vmem [shape: f32[3,32], index: 3, kind: input, shape index: {}]   ;;  %s1081_s4 = inlined_call_operand.vmem [shape: f32[3,1], index: 4, kind: input, shape index: {}]   ;;  %s1082_s5 = inlined_call_operand.vmem [shape: f32[3,128], index: 5, kind: input, shape index: {}]   ;;  %s1083_s6 = inlined_call_operand.vmem [shape: f32[128,2], index: 6, kind: input, shape index: {}]   ;;  %s1084_s7 = inlined_call_operand.<no memory space> [shape: f32[1], index: 7, kind: input, shape index: {}]   ;;  %s1085_s8 = inlined_call_operand.hbm [shape: f32[1,2], index: 8, kind: output, shape index: {0}]   ;;  %s1086_s9 = inlined_call_operand.vmem [shape: f32[3,128], index: 9, kind: output, shape index: {1}]  }
   0x1   :  { %v61_v0 = vld [vmem:[%s1077_s0 + $0x80] sm:$0xff]  ;;  %v62_v1 = vld [vmem:[%s1077_s0 + $0x88] sm:$0xff]  ;;  %v63_v5 = vld [vmem:[%s1077_s0 + $0x90] sm:$0xff]  ;;  %730 = vset.pattern.permute.xlu0 %v772_v7  ;;  %731 = vset.pattern.permute.xlu1 %v772_v7 }
   0x2   :  { %v45_v2 = vld [vmem:[%s1077_s0] sm:$0xff]  ;;  %v655_v3 = vpack.c.bf16 %v62_v1, %v61_v0  ;;  %v46_v4 = vld [vmem:[%s1077_s0 + $0x8] sm:$0xff]  ;;  %v64_v6 = vld [vmem:[%s1077_s0 + $0x98] sm:$0xff] }
   0x3   :  { %v657_v8 = vpack.c.bf16 %v46_v4, %v45_v2  ;;  %v659_v9 = vpack.c.bf16 %v64_v6, %v63_v5  ;;  %v47_v10 = vld [vmem:[%s1077_s0 + $0x10] sm:$0xff]  ;;  %v48_v11 = vld [vmem:[%s1077_s0 + $0x18] sm:$0xff]  ;;  %v65_v12 = vld [vmem:[%s1077_s0 + $0xa0] sm:$0xff] }
   0x4   :  { %656 = vmatprep.subr.bf16.mxu0 %v655_v3  ;;  %v66_v13 = vld [vmem:[%s1077_s0 + $0xa8] sm:$0xff]  ;;  %v661_v14 = vpack.c.bf16 %v48_v11, %v47_v10  ;;  %v49_v16 = vld [vmem:[%s1077_s0 + $0x20] sm:$0xff]  ;;  %v67_v18 = vld [vmem:[%s1077_s0 + $0xb0] sm:$0xff] }
   0x5   :  { %658 = vmatpush3.bf16.msra.mxu0 %v657_v8  ;;  %v663_v15 = vpack.c.bf16 %v66_v13, %v65_v12  ;;  %v50_v17 = vld [vmem:[%s1077_s0 + $0x28] sm:$0xff]  ;;  %v68_v19 = vld [vmem:[%s1077_s0 + $0xb8] sm:$0xff]  ;;  %v51_v22 = vld [vmem:[%s1077_s0 + $0x30] sm:$0xff] }
   0x6   :  { %660 = vmatprep.subr.bf16.mxu0 %v659_v9  ;;  %v665_v20 = vpack.c.bf16 %v50_v17, %v49_v16  ;;  %v667_v21 = vpack.c.bf16 %v68_v19, %v67_v18  ;;  %v52_v23 = vld [vmem:[%s1077_s0 + $0x38] sm:$0xff]  ;;  %v69_v24 = vld [vmem:[%s1077_s0 + $0xc0] sm:$0xff]  ;;  %v70_v25 = vld [vmem:[%s1077_s0 + $0xc8] sm:$0xff] }
   0x7   :  { %v77_v26 = vld [vmem:[%s1077_s0 + $0x100] sm:$0xff]  ;;  %v78_v27 = vld [vmem:[%s1077_s0 + $0x108] sm:$0xff]  ;;  %v669_v30 = vpack.c.bf16 %v52_v23, %v51_v22  ;;  %v79_v31 = vld [vmem:[%s1077_s0 + $0x110] sm:$0xff]  ;;  %v671_v33 = vpack.c.bf16 %v70_v25, %v69_v24 }
   0x8   :  { %v687_v28 = vpack.c.bf16 %v78_v27, %v77_v26  ;;  %v34_v29 = vld [vmem:[%s1078_s1 + $0x8] sm:$0xff]  ;;  %v80_v32 = vld [vmem:[%s1077_s0 + $0x118] sm:$0xff]  ;;  %v53_v34 = vld [vmem:[%s1077_s0 + $0x40] sm:$0xff] }
   0x9   :  { %662 = vmatpush3.bf16.msra.mxu0 %v661_v14  ;;  %182 = vmatprep.mubr.f32.mxu0 %v34_v29  ;;  %v54_v35 = vld [vmem:[%s1077_s0 + $0x48] sm:$0xff]  ;;  %v691_v36 = vpack.c.bf16 %v80_v32, %v79_v31  ;;  %v35_v37 = vld [vmem:[%s1078_s1 + $0x10] sm:$0xff]  ;;  %v72_v39 = vld [vmem:[%s1077_s0 + $0xd8] sm:$0xff] }
   0xa   :  { %664 = vmatprep.subr.bf16.mxu0 %v663_v15  ;;  %688 = vmatprep.subr.bf16.mxu1 %v687_v28  ;;  %v71_v38 = vld [vmem:[%s1077_s0 + $0xd0] sm:$0xff]  ;;  %v673_v40 = vpack.c.bf16 %v54_v35, %v53_v34  ;;  %v81_v41 = vld [vmem:[%s1079_s2] sm:$0xff]  ;;  %v56_v45 = vld [vmem:[%s1077_s0 + $0x58] sm:$0xff] }
   0xb   :  { %690 = vmatpush3.bf16.msra.mxu1 %v687_v28  ;;  %603 = vmatprep.mubr.msk.f32.mxu1 %vm105_vm0, %v35_v37  ;;  %v83_v42 = vld [vmem:[%s1079_s2 + $0x10] sm:$0xff]  ;;  %v675_v43 = vpack.c.bf16 %v72_v39, %v71_v38 }
   0xc   :  { %692 = vmatprep.subr.bf16.mxu1 %v691_v36  ;;  %v55_v44 = vld [vmem:[%s1077_s0 + $0x50] sm:$0xff]  ;;  %87 = vperm.xlu0 %730, %v81_v41  }
   0xd   :  { %666 = vmatpush3.bf16.msra.mxu0 %v665_v20 }
   0xe   :  { %668 = vmatprep.subr.bf16.mxu0 %v667_v21 }
  0x11   :  { %670 = vmatpush3.bf16.msra.mxu0 %v669_v30 }
  0x12   :  { %672 = vmatprep.subr.bf16.mxu0 %v671_v33 }
  0x13   :  { %16 = vsyncpa [#allocation4], 0  ;;  %v73_v46 = vld [vmem:[%s1077_s0 + $0xe0] sm:$0xff]  ;;  %v74_v47 = vld [vmem:[%s1077_s0 + $0xe8] sm:$0xff]  ;;  %694 = vmatpush3.bf16.msra.mxu1 %v691_v36  ;;  %97 = vperm.xlu1 %731, %v83_v42   ;;  %v677_v51 = vpack.c.bf16 %v56_v45, %v55_v44  ;;  %v773_v8 = vmov 0.0|0.0   ;;  %vm774_vm1 = vmmov 0  }
  0x14   :  { %v38_v48 = vld [vmem:[%s1078_s1 + $0x28] sm:$0xff]  ;;  %v41_v49 = vld [vmem:[%s1078_s1 + $0x40] sm:$0xff]  ;;  %v84_v52 = vld [vmem:[%s1079_s2 + $0x18] sm:$0xff]  ;;  %v679_v53 = vpack.c.bf16 %v74_v47, %v73_v46  ;;  %695 = vmatprep.subr.bf16.mxu1 %v773_v8  ;;  %v775_v9 = vmov 0.0   ;;  %vm396_vm2 = vcmask 1042432   ;;  %vm492_vm3 = vcmask 8192  }
  0x15   :  { %v82_v50 = vld [vmem:[%s1079_s2 + $0x8] sm:$0xff]  ;;  %674 = vmatpush3.bf16.msra.mxu0 %v673_v40  ;;  %v57_v54 = vld [vmem:[%s1077_s0 + $0x60] sm:$0xff]  ;;  %v75_v56 = vld [vmem:[%s1077_s0 + $0xf0] sm:$0xff] }
  0x16   :  { %676 = vmatprep.subr.bf16.mxu0 %v675_v43  ;;  %v58_v55 = vld [vmem:[%s1077_s0 + $0x68] sm:$0xff]  ;;  %604 = vmatmul.mubr.msk.f32.vlgmr.msra.gmra.mrb[0].mxu1 %vm105_vm0, %v38_v48  ;;  %v76_v57 = vld [vmem:[%s1077_s0 + $0xf8] sm:$0xff]  ;;  %v313_v59 = vld [vmem:[%s1081_s4] sm:$0x7] }
  0x17   :  { %606 = vmatprep.mubr.msk.f32.mxu1 %vm105_vm0, %v41_v49  ;;  %v44_v58 = vld [vmem:[%s1078_s1 + $0x58] sm:$0xff]  ;;  %92 = vperm.xlu0 %730, %v82_v50   ;;  %v681_v60 = vpack.c.bf16 %v58_v55, %v57_v54  ;;  %v683_v61 = vpack.c.bf16 %v76_v57, %v75_v56  ;;  %v59_v62 = vld [vmem:[%s1077_s0 + $0x70] sm:$0xff]  ;;  %v33_v1 = vld [vmem:[%s1078_s1] sm:$0xff] }
  0x18   :  { %102 = vperm.xlu1 %731, %v84_v52   ;;  %v60_v63 = vld [vmem:[%s1077_s0 + $0x78] sm:$0xff]  ;;  %v37_v2 = vld [vmem:[%s1078_s1 + $0x20] sm:$0xff]  ;;  %v39_v5 = vld [vmem:[%s1078_s1 + $0x30] sm:$0xff] }
  0x19   :  { %678 = vmatpush3.bf16.msra.mxu0 %v677_v51  ;;  %v685_v0 = vpack.c.bf16 %v60_v63, %v59_v62  ;;  %v36_v3 = vld [vmem:[%s1078_s1 + $0x18] sm:$0xff]  ;;  %v43_v6 = vld [vmem:[%s1078_s1 + $0x50] sm:$0xff]  ;;  %v42_v7 = vld [vmem:[%s1078_s1 + $0x48] sm:$0xff] }
  0x1a   :  { %680 = vmatprep.subr.bf16.mxu0 %v679_v53  ;;  %607 = vmatmul.mubr.msk.f32.gmra.mrb[2].mxu1 %vm105_vm0, %v44_v58  ;;  %v40_v4 = vld [vmem:[%s1078_s1 + $0x38] sm:$0xff]  ;;  %v404_v55 = vld [vmem:[%s1083_s6] sm:$0xff]  ;;  %v405_v56 = vld [vmem:[%s1083_s6 + $0x8] sm:$0xff] }
  0x1b   :  { %316 = vperm.xlu0 %730, %v313_v59   ;;  %617 = vmatprep.mubr.msk.f32.mxu1 %vm774_vm1, %v775_v9  ;;  %v312_v58 = vld [vmem:[%s1080_s3] sm:$0x7]  ;;  %v702_v59 = vpack.c.bf16 %v405_v56, %v404_v55 }
  0x1c   :  { %v408_v63 = vld [vmem:[%s1083_s6 + $0x20] sm:$0xff] }
  0x1d   :  { %682 = vmatpush3.bf16.msra.mxu0 %v681_v60  ;;  %v406_v60 = vld [vmem:[%s1083_s6 + $0x10] sm:$0xff] }
  0x1e   :  { %684 = vmatprep.subr.bf16.mxu0 %v683_v61  ;;  %v407_v61 = vld [vmem:[%s1083_s6 + $0x18] sm:$0xff] }
  0x1f   :  { %v705_v62 = vpack.c.bf16 %v407_v61, %v406_v60 }
  0x21   :  { %686 = vmatpush3.bf16.msra.mxu0 %v685_v0  ;;  %v409_v0 = vld [vmem:[%s1083_s6 + $0x28] sm:$0xff] }
  0x24   :  { %183 = vmatmul.mubr.f32.vlgmr.msra.gmra.mrb[0].mxu0 %v33_v1  ;;  %v708_v1 = vpack.c.bf16 %v409_v0, %v408_v63 }
  0x25   :  { %187 = vmatprep.mubr.f32.mxu0 %v37_v2  ;;  %v410_v2 = vld [vmem:[%s1083_s6 + $0x30] sm:$0xff] }
  0x28   :  { %188 = vmatmul.mubr.f32.gmra.mrb[2].mxu0 %v36_v3  ;;  %v411_v3 = vld [vmem:[%s1083_s6 + $0x38] sm:$0xff] }
  0x29   :  { %192 = vmatprep.mubr.f32.mxu0 %v40_v4  ;;  %v711_v4 = vpack.c.bf16 %v411_v3, %v410_v2 }
  0x2c   :  { %193 = vmatmul.mubr.f32.gmra.mrb[4].mxu0 %v39_v5  ;;  %v412_v5 = vld [vmem:[%s1083_s6 + $0x40] sm:$0xff] }
  0x2d   :  { %197 = vmatprep.mubr.f32.mxu0 %v43_v6  ;;  %v413_v6 = vld [vmem:[%s1083_s6 + $0x48] sm:$0xff] }
  0x30   :  { %198 = vmatmul.mubr.f32.gmra.mrb[6].mxu0 %v42_v7  ;;  %v714_v7 = vpack.c.bf16 %v413_v6, %v412_v5 }
  0x8b   :  { %v88_v15 = vpop.permute.xlu0 %87 }
  0x92   :  { %v98_v27 = vpop.permute.xlu1 %97 }
  0x96   :  { %v93_v23 = vpop.permute.xlu0 %92 }
  0x97   :  { %v103_v37 = vpop.permute.xlu1 %102 }
  0xe9   :  { %v605_v10 = vpop.f32.mrb[0].mxu1 }
  0xea   :  { %v269_v11 = vpop.f32.mrb[1].mxu1 }
  0xed   :  { %v608_v12 = vpop.f32.mrb[2].mxu1 }
  0xee   :  { %v279_v13 = vpop.f32.mrb[3].mxu1 }
  0xf7   :  { %v553_v14 = vpop.f32.mrb[0].mxu0 }
  0xf8   :  { %v554_v16 = vpop.f32.mrb[1].mxu0 }
  0xf9   :  { %v555_v17 = vadd.f32 %v554_v16, %v553_v14  ;;  %v419_v16 = vld [vmem:[%s1083_s6 + $0x78] sm:$0xff] }
  0xfb   :  { %v556_v18 = vpop.f32.mrb[2].mxu0  ;;  %v185_v19 = vadd.f32 %v555_v17, %v88_v15  ;;  %v418_v15 = vld [vmem:[%s1083_s6 + $0x70] sm:$0xff] }
  0xfc   :  { %v557_v20 = vpop.f32.mrb[3].mxu0  ;;  %v723_v17 = vpack.c.bf16 %v419_v16, %v418_v15 }
  0xfd   :  { %v558_v21 = vadd.f32 %v557_v20, %v556_v18  ;;  %v270_v22 = vadd.f32 %v269_v11, %v185_v19  ;;  %v317_v18 = vpop.permute.xlu0 %316 }
  0xff   :  { %v190_v24 = vadd.f32 %v558_v21, %v93_v23  ;;  %v516_v25 = vmul.f32 -1.442695, %v270_v22  ;;  %v559_v26 = vpop.f32.mrb[4].mxu0  ;;  %v394_v22 = vld [vmem:[%s1082_s5] sm:$0x7]  ;;  %s776_s5 = smov [#allocation3]  }
 0x100   :  { %v560_v28 = vpop.f32.mrb[5].mxu0  ;;  %s500_s16 = sshll.u32 %s776_s5, 4  ;;  %s501_s16 = int_to_ptr.vmem [resolvable:$true] %s500_s16 }
 0x101   :  { %v275_v29 = vadd.f32 %v605_v10, %v190_v24  ;;  %732 = vpow2.f32 %v516_v25  ;;  %v561_v30 = vadd.f32 %v560_v28, %v559_v26  ;;  %v415_v10 = vld [vmem:[%s1083_s6 + $0x58] sm:$0xff]  ;;  %s752_s17 = scalar_lea.vmem %s501_s16, 32  ;;  %p753_p1 = scmp.lt.s32.totalorder %s501_s16, %s501_s16 }
 0x103   :  { %v517_v31 = vmul.f32 -1.442695, %v275_v29  ;;  %v562_v32 = vpop.f32.mrb[6].mxu0  ;;  %v195_v33 = vadd.f32 %v561_v30, %v98_v27 }
 0x104   :  { %v563_v34 = vpop.f32.mrb[7].mxu0 }
 0x105   :  { %734 = vpow2.f32 %v517_v31  ;;  %v564_v35 = vadd.f32 %v563_v34, %v562_v32  ;;  %v280_v36 = vadd.f32 %v279_v13, %v195_v33  ;;  %v417_v13 = vld [vmem:[%s1083_s6 + $0x68] sm:$0xff]  ;;  %v421_v31 = vstv %s1084_s7 }
 0x107   :  { %v200_v38 = vadd.f32 %v564_v35, %v103_v37  ;;  %v518_v39 = vmul.f32 -1.442695, %v280_v36 }
 0x109   :  { %v285_v40 = vadd.f32 %v608_v12, %v200_v38  ;;  %736 = vpow2.f32 %v518_v39  ;;  %v416_v12 = vld [vmem:[%s1083_s6 + $0x60] sm:$0xff] }
 0x10a   :  { %v720_v14 = vpack.c.bf16 %v417_v13, %v416_v12 }
 0x10b   :  { %v733_v41 = vpop.eup %732  ;;  %v519_v42 = vmul.f32 -1.442695, %v285_v40 }
 0x10c   :  { %v300_v43 = vadd.f32 1.0, %v733_v41 }
 0x10d   :  { %738 = vpow2.f32 %v519_v42 }
 0x10e   :  { %740 = vrcp.f32 %v300_v43 }
 0x10f   :  { %v735_v44 = vpop.eup %734 }
 0x110   :  { %v301_v45 = vadd.f32 1.0, %v735_v44 }
 0x112   :  { %742 = vrcp.f32 %v301_v45 }
 0x113   :  { %v737_v46 = vpop.eup %736 }
 0x114   :  { %v302_v47 = vadd.f32 1.0, %v737_v46 }
 0x116   :  { %744 = vrcp.f32 %v302_v47 }
 0x117   :  { %v739_v48 = vpop.eup %738 }
 0x118   :  { %v303_v49 = vadd.f32 1.0, %v739_v48  ;;  %v741_v50 = vpop.eup %740 }
 0x11a   :  { %746 = vrcp.f32 %v303_v49 }
 0x11c   :  { %v743_v51 = vpop.eup %742 }
 0x11d   :  { %v696_v52 = vpack.c.bf16 %v743_v51, %v741_v50 }
 0x11f   :  { %697 = vmatpush3.bf16.msra.mxu1 %v696_v52 }
 0x120   :  { %698 = vmatprep.subr.bf16.mxu1 %v773_v8  ;;  %v745_v53 = vpop.eup %744 }
 0x124   :  { %v747_v54 = vpop.eup %746 }
 0x125   :  { %v699_v57 = vpack.c.bf16 %v747_v54, %v745_v53 }
 0x127   :  { %700 = vmatpush3.bf16.msra.mxu1 %v699_v57 }
 0x128   :  { %701 = vmatprep.subr.bf16.mxu1 %v773_v8 }
 0x12a   :  { %618 = vmatmul.mubr.msk.f32.vlgmr.msra.gmra.mrb[4].mxu1 %vm105_vm0, %v312_v58 }
 0x12b   :  { %703 = vmatpush3.bf16.msra.mxu1 %v702_v59  ;;  %652 = vmatprep.mubr.msk.f32.mxu1 %vm774_vm1, %v775_v9  ;;  %v414_v9 = vld [vmem:[%s1083_s6 + $0x50] sm:$0xff] }
 0x12c   :  { %704 = vmatprep.subr.bf16.mxu1 %v773_v8  ;;  %v717_v11 = vpack.c.bf16 %v415_v10, %v414_v9 }
 0x12f   :  { %706 = vmatpush3.bf16.msra.mxu1 %v705_v62 }
 0x130   :  { %707 = vmatprep.subr.bf16.mxu1 %v773_v8 }
 0x133   :  { %709 = vmatpush3.bf16.msra.mxu1 %v708_v1 }
 0x134   :  { %710 = vmatprep.subr.bf16.mxu1 %v773_v8 }
 0x137   :  { %712 = vmatpush3.bf16.msra.mxu1 %v711_v4 }
 0x138   :  { %713 = vmatprep.subr.bf16.mxu1 %v773_v8 }
 0x13b   :  { %715 = vmatpush3.bf16.msra.mxu1 %v714_v7 }
 0x13c   :  { %716 = vmatprep.subr.bf16.mxu1 %v773_v8 }
 0x13f   :  { %718 = vmatpush3.bf16.msra.mxu1 %v717_v11 }
 0x140   :  { %719 = vmatprep.subr.bf16.mxu1 %v773_v8 }
 0x143   :  { %721 = vmatpush3.bf16.msra.mxu1 %v720_v14 }
 0x144   :  { %722 = vmatprep.subr.bf16.mxu1 %v773_v8 }
 0x147   :  { %724 = vmatpush3.bf16.msra.mxu1 %v723_v17 }
 0x1fd   :  { %v388_v19 = vpop.f32.mrb[4].mxu1 }
 0x1fe   :  { %v389_v20 = vadd.f32 %v388_v19, %v317_v18  ;;  %v619_v21 = vpop.f32.mrb[5].mxu1 }
 0x200   :  { %v392_v23 = vmax.f32 %v389_v20, 0.0 }
 0x202   :  { %393 = vst [vmem:[%s1086_s9] sm:$0x7] %v392_v23  ;;  %v395_v8 = vmul.f32 %v394_v22, %v392_v23  ;;  %s748_s9 = scalar_lea.vmem %s501_s16, 16 }
 0x203   :  { %p749_p0 = scmp.ne.s32.totalorder %s501_s16, %s748_s9  ;;  %p754_p2 = scmp.lt.s32.totalorder %s752_s17, %s748_s9 }
 0x204   :  { %v397_v24 = vsel %vm396_vm2, %v395_v8, 0.0 }
 0x205   :  { %v398_v25 = vrot.slane %v397_v24, 4  ;;  %p755_p3 = por %p754_p2, %p753_p1 }
 0x207   :  { %v399_v26 = vadd.f32 %v398_v25, %v397_v24  ;;  %p756_p4 = pnand %p755_p3, %p749_p0 }
 0x209   :  { %v400_v27 = vrot.slane %v399_v26, 2 }
 0x20b   :  { %v401_v28 = vadd.f32 %v400_v27, %v399_v26 }
 0x20d   :  { %v402_v29 = vrot.slane %v401_v28, 1 }
 0x20f   :  { %v403_v30 = vadd.f32 %v402_v29, %v401_v28 }
 0x211   :  { %653 = vmatmul.mubr.f32.vlgmr.msra.gmra.mrb[6].mxu1 %v403_v30 }
 0x2e4   :  { %v488_v32 = vpop.f32.mrb[6].mxu1 }
 0x2e5   :  { %v489_v33 = vadd.f32 %v488_v32, %v421_v31  ;;  %v654_v34 = vpop.f32.mrb[7].mxu1 }
 0x2e7   :  { %493 = vst.msk [vmem:[#allocation3] sm:$0x1] %vm492_vm3, %v489_v33 }
 0x2e8   :  { %759 = shalt.err (!%p756_p4)
}
 0x2e9   :  { %s760_s7 = scalar_lea.hbm %s1085_s8, 16 }
 0x2ea   :  { %p761_p5 = scmp.ne.s32.totalorder %s1085_s8, %s760_s7  ;;  %p764_p6 = scmp.lt.u32.totalorder %s760_s7, %s1085_s8 }
 0x2ec   :  { %p766_p7 = pnand %p764_p6, %p761_p5 }
 0x2ee   :  { %769 = shalt.err (!%p766_p7)
}
 0x2ef   :  { %503 = dma.vmem_to_hbm [thread:$0]  %s501_s16, 16, %s1085_s8, [#allocation4]  }
 0x2f0   :  { %770 = dma.done.wait [#allocation4], 16  }
 0x2f1   :  { %771 = vsyncadd [#allocation4], 4294967280 }
 0x2f2   :  { %511 = vsyncpa [#allocation4], 1 }

</bundles_post_ra>
